<compile_context>
chip_gen: v7x
topology: tpu7x:2x2x1
jax: 0.10.0
libtpu: 0.0.40
codegen_flags: <defaults>
</compile_context>

<pallas_src>
import functools

import jax
import jax.numpy as jnp
from jax.experimental import pallas as pl
from jax.experimental.pallas import tpu as pltpu


def _round_down(x, m):
    return (x // m) * m


def _vmem_limit_and_budget():
    """Generation-aware scoped-VMEM limit and per-kernel tile budget (bytes)."""
    try:
        cap = int(getattr(pltpu.get_tpu_info(), "vmem_capacity_bytes", 0))
    except Exception:
        cap = 0
    if cap <= 0:
        cap = 64 << 20  # conservative (v7x-sized) fallback
    # v5e/v6e (128 MiB physical) -> 64 MiB scoped; v7x (64 MiB) -> 32 MiB.
    limit = min(64 << 20, max(32 << 20, cap // 2))
    budget = (limit * 3) // 4  # headroom for compiler internals
    return limit, budget


def _row_tile(r, tr_budget, cap=2048):
    """Largest legal row tile: multiple of 8 (or full extent when r <= 8)."""
    if r <= 8:
        return r                      # block dim == full array dim is legal
    tr = min(tr_budget, _round_down(r, 8), cap)
    return max(tr, 8)


def _recip(denom):
    # EUP approximate reciprocal on the (rows, 1) column + one Newton step
    # (only `rows` values, effectively free) -> near-f32 precision without a
    # per-element divide.
    inv = pl.reciprocal(denom, approx=True)
    return inv * (2.0 - denom * inv)


def _compiler_params(semantics, vmem_limit):
    return pltpu.CompilerParams(dimension_semantics=semantics,
                                vmem_limit_bytes=vmem_limit)


# ---------------------------------------------------------------------------
# Path A: full H*W per row (one lane-dense reduction per (n, c) row).
# ---------------------------------------------------------------------------
def _inorm_full_row_kernel(x_ref, o_ref, *, eps, inv_ddof):
    x = x_ref[...].astype(jnp.float32)                      # (tr, HW)
    mean = jnp.mean(x, axis=-1, keepdims=True)              # (tr, 1)
    centered = x - mean
    var = jnp.sum(centered * centered, axis=-1, keepdims=True) * inv_ddof
    denom = jnp.sqrt(var) + eps                              # eps on std (torch)
    o_ref[...] = (centered * _recip(denom)).astype(o_ref.dtype)


# ---------------------------------------------------------------------------
# Path B: spatially tiled (large H*W).  Pass 1: per-row sum/sumsq -> mean and
# 1/(std + eps).  Pass 2: normalize sweep (x - mean) * inv.
# ---------------------------------------------------------------------------
def _inorm_stats_kernel(x_ref, mean_ref, inv_ref, s_acc, ss_acc,
                        *, hw, thw, eps, inv_ddof, ragged):
    j = pl.program_id(1)

    @pl.when(j == 0)
    def _():
        s_acc[...] = jnp.zeros_like(s_acc)
        ss_acc[...] = jnp.zeros_like(ss_acc)

    x = x_ref[...].astype(jnp.float32)                       # (tr, thw)
    if ragged:
        # Mask out-of-bounds lanes of the last H*W block (kills garbage/NaN).
        col = jax.lax.broadcasted_iota(jnp.int32, x.shape, 1) + j * thw
        x = jnp.where(col < hw, x, 0.0)
    s_acc[...] += jnp.sum(x, axis=-1, keepdims=True)
    ss_acc[...] += jnp.sum(x * x, axis=-1, keepdims=True)

    @pl.when(j == pl.num_programs(1) - 1)
    def _():
        s = s_acc[...]
        mean = s * (1.0 / hw)
        # One-pass E[x^2] - mean^2 (clamped); acceptable for activation ranges.
        var = jnp.maximum((ss_acc[...] - s * mean) * inv_ddof, 0.0)
        mean_ref[...] = mean
        inv_ref[...] = _recip(jnp.sqrt(var) + eps)


def _inorm_normalize_kernel(x_ref, mean_ref, inv_ref, o_ref):
    x = x_ref[...].astype(jnp.float32)
    o_ref[...] = ((x - mean_ref[...]) * inv_ref[...]).astype(o_ref.dtype)


# ---------------------------------------------------------------------------
# Wrapper
# ---------------------------------------------------------------------------
def my_instance_norm_2d(x, eps=1e-5, hw_tile=None, force_hw_tiling=False):
    """x: (N, C, H, W). Returns (N, C, H, W) in x.dtype."""
    N, C, H, W = x.shape
    R, HW = N * C, H * W
    # TODO(synk): when H*W is not a multiple of 128, re-layout spatial to a
    # 128-dense lane axis (masked-vst tail otherwise on the full-row path).
    x2 = x.reshape(R, HW)

    itemsize = jnp.dtype(x.dtype).itemsize
    vmem_limit, budget = _vmem_limit_and_budget()
    # torch.Tensor.std is unbiased (ddof=1); hw == 1 -> NaN, same as torch.
    inv_ddof = 1.0 / (HW - 1) if HW > 1 else float("nan")

    # Per-row VMEM bytes on the full-row path: double-buffered in + out blocks
    # at the input dtype plus ~3 f32 compute temporaries per row.
    bytes_per_row = 2 * 2 * HW * itemsize + 3 * HW * 4
    use_full_row = (not force_hw_tiling) and bytes_per_row * 8 <= budget

    if use_full_row:
        tr = _row_tile(R, max(8, budget // bytes_per_row))
        kernel = functools.partial(_inorm_full_row_kernel,
                                   eps=eps, inv_ddof=inv_ddof)
        out2 = pl.pallas_call(
            kernel,
            out_shape=jax.ShapeDtypeStruct((R, HW), x.dtype),
            grid=(pl.cdiv(R, tr),),
            in_specs=[pl.BlockSpec((tr, HW), lambda i: (i, 0))],
            out_specs=pl.BlockSpec((tr, HW), lambda i: (i, 0)),
            compiler_params=_compiler_params(("parallel",), vmem_limit),
        )(x2)
        return out2.reshape(N, C, H, W)

    # ---- spatially tiled path (large H*W, or forced for testing) ----
    thw = hw_tile if hw_tile is not None else 2048
    thw = max(128, _round_down(min(thw, HW), 128))
    ragged = (HW % thw) != 0

    bytes_per_row_t = 2 * 2 * thw * itemsize + 3 * thw * 4 + 4 * 4
    tr = _row_tile(R, max(8, budget // bytes_per_row_t))
    nrt, nht = pl.cdiv(R, tr), pl.cdiv(HW, thw)

    stats = functools.partial(_inorm_stats_kernel, hw=HW, thw=thw, eps=eps,
                              inv_ddof=inv_ddof, ragged=ragged)
    mean, inv = pl.pallas_call(
        stats,
        out_shape=(jax.ShapeDtypeStruct((R, 1), jnp.float32),
                   jax.ShapeDtypeStruct((R, 1), jnp.float32)),
        grid=(nrt, nht),
        in_specs=[pl.BlockSpec((tr, thw), lambda i, j: (i, j))],
        out_specs=[pl.BlockSpec((tr, 1), lambda i, j: (i, 0)),
                   pl.BlockSpec((tr, 1), lambda i, j: (i, 0))],
        scratch_shapes=[pltpu.VMEM((tr, 1), jnp.float32),
                        pltpu.VMEM((tr, 1), jnp.float32)],
        compiler_params=_compiler_params(("parallel", "arbitrary"), vmem_limit),
    )(x2)

    out2 = pl.pallas_call(
        _inorm_normalize_kernel,
        out_shape=jax.ShapeDtypeStruct((R, HW), x.dtype),
        grid=(nrt, nht),
        in_specs=[pl.BlockSpec((tr, thw), lambda i, j: (i, j)),
                  pl.BlockSpec((tr, 1), lambda i, j: (i, 0)),
                  pl.BlockSpec((tr, 1), lambda i, j: (i, 0))],
        out_specs=pl.BlockSpec((tr, thw), lambda i, j: (i, j)),
        compiler_params=_compiler_params(("parallel", "parallel"), vmem_limit),
    )(x2, mean, inv)
    return out2.reshape(N, C, H, W)


def reference(x, eps=1e-5):
    N, C, H, W = x.shape
    xf = x.reshape(N, C, -1)
    mean = xf.mean(axis=2).reshape(N, C, 1, 1)
    std = xf.std(axis=2, ddof=1).reshape(N, C, 1, 1)  # unbiased, like torch.std
    return (x - mean) / (std + eps)


if __name__ == "__main__":
    key = jax.random.PRNGKey(0)

    # (N, C, H, W) = (2, 4, 16, 16): H*W = 256 lanes per row, 8 rows total.
    N, C, H, W = 2, 4, 16, 16
    x = jax.random.normal(key, (N, C, H, W), dtype=jnp.float32) * 1.7 + 0.3

    ref = reference(x, eps=1e-5)

    # Full-row path (single lane-dense reduction per (n, c)).
    out = jax.block_until_ready(my_instance_norm_2d(x, eps=1e-5))
    assert out.shape == (N, C, H, W)
    assert bool(jnp.max(jnp.abs(out - ref)) < 5e-4), "full-row path mismatch"

    # Spatially tiled path, forced to exercise the large-H*W pipeline.
    out_t = jax.block_until_ready(
        my_instance_norm_2d(x, eps=1e-5, force_hw_tiling=True, hw_tile=128))
    assert bool(jnp.max(jnp.abs(out_t - ref)) < 5e-4), "tiled path mismatch"

    print("KERNEL_OK")
</pallas_src>

<mosaic_0001>
module attributes {stable_mosaic.version = 11 : i64} {
  func.func @_inorm_full_row_kernel(%arg0: i32, %arg1: memref<8x256xf32, #tpu.memory_space<vmem>>, %arg2: memref<8x256xf32, #tpu.memory_space<vmem>>) attributes {dimension_semantics = [#tpu.dimension_semantics<parallel>], iteration_bounds = array<i64: 1>, scalar_prefetch = 0 : i64, scratch_operands = 0 : i64, tpu.core_type = #tpu.core_type<tc>, window_params = [{transform_indices = @transform_0, window_bounds = array<i64: 8, 256>}, {transform_indices = @transform_1, window_bounds = array<i64: 8, 256>}]} {
    %c0 = arith.constant 0 : index
    %c0_0 = arith.constant 0 : index
    %0 = vector.load %arg1[%c0, %c0_0] : memref<8x256xf32, #tpu.memory_space<vmem>>, vector<8x256xf32>
    %cst = arith.constant dense<0.000000e+00> : vector<8xf32>
    %1 = vector.multi_reduction <add>, %0, %cst [1] : vector<8x256xf32> to vector<8xf32>
    %2 = vector.shape_cast %1 : vector<8xf32> to vector<8x1xf32>
    %cst_1 = arith.constant 2.560000e+02 : f32
    %3 = vector.broadcast %cst_1 : f32 to vector<8x1xf32>
    %4 = arith.divf %2, %3 : vector<8x1xf32>
    %5 = vector.broadcast %4 : vector<8x1xf32> to vector<8x256xf32>
    %6 = arith.subf %0, %5 : vector<8x256xf32>
    %7 = arith.mulf %6, %6 : vector<8x256xf32>
    %cst_2 = arith.constant dense<0.000000e+00> : vector<8xf32>
    %8 = vector.multi_reduction <add>, %7, %cst_2 [1] : vector<8x256xf32> to vector<8xf32>
    %9 = vector.shape_cast %8 : vector<8xf32> to vector<8x1xf32>
    %cst_3 = arith.constant 0.00392156886 : f32
    %10 = vector.broadcast %cst_3 : f32 to vector<8x1xf32>
    %11 = arith.mulf %9, %10 : vector<8x1xf32>
    %12 = math.sqrt %11 : vector<8x1xf32>
    %cst_4 = arith.constant 9.99999974E-6 : f32
    %13 = vector.broadcast %cst_4 : f32 to vector<8x1xf32>
    %14 = arith.addf %12, %13 : vector<8x1xf32>
    %15 = tpu.reciprocal %14 {approx = true} : vector<8x1xf32> -> vector<8x1xf32>
    %16 = arith.mulf %14, %15 : vector<8x1xf32>
    %cst_5 = arith.constant 2.000000e+00 : f32
    %17 = vector.broadcast %cst_5 : f32 to vector<8x1xf32>
    %18 = arith.subf %17, %16 : vector<8x1xf32>
    %19 = arith.mulf %15, %18 : vector<8x1xf32>
    %20 = vector.broadcast %19 : vector<8x1xf32> to vector<8x256xf32>
    %21 = arith.mulf %6, %20 : vector<8x256xf32>
    %c0_6 = arith.constant 0 : index
    %c0_7 = arith.constant 0 : index
    %22 = vector.load %arg2[%c0_6, %c0_7] : memref<8x256xf32, #tpu.memory_space<vmem>>, vector<8x256xf32>
    tpu.vector_store %arg2[%c0_6, %c0_7], %21 {strides = array<i32>} : memref<8x256xf32, #tpu.memory_space<vmem>>, vector<8x256xf32>,
    return
  }
  func.func @transform_0(%arg0: i32) -> (i32, i32) {
    %c0_i32 = arith.constant 0 : i32
    %c0_i32_0 = arith.constant 0 : i32
    return %arg0, %c0_i32 : i32, i32
  }
  func.func @transform_1(%arg0: i32) -> (i32, i32) {
    %c0_i32 = arith.constant 0 : i32
    %c0_i32_0 = arith.constant 0 : i32
    return %arg0, %c0_i32 : i32, i32
  }
}

</mosaic_0001>

<bundles_post_ra>
// kernel: tpu_custom_call.1
= control target key start
LH: loop header
LB: loop body
LE: loop exit
PB: predicated region body
PF: predicated region fallthrough
CT: control target
= control target key end

     0   :  { %6 = vsyncpa [#allocation3], 0  ;;  %s157_s0 = inlined_call_operand.hbm [shape: f32[8,256], index: 0, kind: input, shape index: {}]   ;;  %s158_s1 = inlined_call_operand.hbm [shape: f32[8,256], index: 1, kind: output, shape index: {}]  }
   0x1   :  { %7 = vsyncpa [#allocation4], 0  ;;  %s121_s6 = smov [#allocation2]   ;;  %s73_s10 = scalar_lea.hbm %s157_s0, 256 }
   0x2   :  { %s14_s7 = sshll.u32 %s121_s6, 4  ;;  %p74_p0 = scmp.ne.s32.totalorder %s157_s0, %s73_s10  ;;  %s15_s7 = int_to_ptr.vmem [resolvable:$true] %s14_s7 }
   0x3   :  { %p77_p1 = scmp.lt.u32.totalorder %s73_s10, %s157_s0 }
   0x5   :  { %p79_p2 = pnand %p77_p1, %p74_p0 }
   0x7   :  { %82 = shalt.err (!%p79_p2)
}
   0x8   :  { %s83_s15 = scalar_lea.vmem %s15_s7, 256  ;;  %p88_p4 = scmp.lt.s32.totalorder %s15_s7, %s15_s7 }
   0x9   :  { %p84_p3 = scmp.ne.s32.totalorder %s15_s7, %s83_s15  ;;  %p89_p5 = scmp.lt.s32.totalorder %s83_s15, %s83_s15 }
   0xb   :  { %p90_p6 = por %p89_p5, %p88_p4 }
   0xd   :  { %p91_p7 = pnand %p90_p6, %p84_p3 }
   0xf   :  { %94 = shalt.err (!%p91_p7)
}
  0x10   :  { %17 = dma.hbm_to_vmem [thread:$0]  %s157_s0, 256, %s15_s7, [#allocation3]  }
  0x11   :  { %117 = dma.done.wait [#allocation3], 256  }
  0x12   :  { %118 = vsyncadd [#allocation3], 4294967040  ;;  %v21_v0 = vld [vmem:[#allocation2] sm:$0xff]  ;;  %v22_v1 = vld [vmem:[#allocation2 + $0x8] sm:$0xff]  ;;  %s122_s0 = smov [#allocation5]  }
  0x13   :  { %v23_v2 = vadd.f32 %v22_v1, %v21_v0  ;;  %s58_s18 = sshll.u32 %s122_s0, 4  ;;  %s59_s18 = int_to_ptr.vmem [resolvable:$true] %s58_s18 }
  0x14   :  { %s95_s19 = scalar_lea.vmem %s59_s18, 256  ;;  %p100_p9 = scmp.lt.s32.totalorder %s59_s18, %s59_s18 }
  0x15   :  { %24 = vadd.xlane.f32.xlu0 %v23_v2  ;;  %p96_p8 = scmp.ne.s32.totalorder %s59_s18, %s95_s19  ;;  %p101_p10 = scmp.lt.s32.totalorder %s95_s19, %s95_s19 }
  0x17   :  { %p102_p11 = por %p101_p10, %p100_p9 }
  0x19   :  { %p103_p12 = pnand %p102_p11, %p96_p8 }
  0xa2   :  { %v25_v3 = vpop.xlane.xlu0 %24 }
  0xa3   :  { %v27_v4 = vmul.f32 0.00390625, %v25_v3 }
  0xa5   :  { %v28_v5 = vsub.f32 %v21_v0, %v27_v4  ;;  %v29_v6 = vsub.f32 %v22_v1, %v27_v4 }
  0xa7   :  { %v30_v7 = vmul.f32 %v28_v5, %v28_v5  ;;  %v31_v8 = vmul.f32 %v29_v6, %v29_v6 }
  0xa9   :  { %v32_v9 = vadd.f32 %v31_v8, %v30_v7 }
  0xab   :  { %33 = vadd.xlane.f32.xlu0 %v32_v9 }
 0x138   :  { %v34_v10 = vpop.xlane.xlu0 %33 }
 0x139   :  { %v35_v11 = vmul.f32 0.003921569, %v34_v10 }
 0x13b   :  { %69 = vrsqrt.f32 %v35_v11  ;;  %vm38_vm0 = vcmp.eq.f32.partialorder %v35_v11, inf  ;;  %v41_v14 = vand.u32 2147483648, %v35_v11  ;;  %vm40_vm1 = vcmp.eq.f32.partialorder %v35_v11, 0.0 }
 0x145   :  { %v70_v12 = vpop.eup %69 }
 0x146   :  { %v37_v13 = vmul.f32 %v70_v12, %v35_v11 }
 0x148   :  { %v39_v15 = vsel %vm38_vm0, %v35_v11, %v37_v13 }
 0x149   :  { %v42_v16 = vsel %vm40_vm1, %v41_v14, %v39_v15 }
 0x14a   :  { %v43_v17 = vadd.f32 1e-05, %v42_v16 }
 0x14c   :  { %71 = vrcp.f32 %v43_v17 }
 0x156   :  { %v72_v18 = vpop.eup %71 }
 0x157   :  { %v45_v19 = vmul.f32 %v72_v18, %v43_v17 }
 0x159   :  { %v46_v20 = vsub.f32 2.0, %v45_v19 }
 0x15b   :  { %v47_v21 = vmul.f32 %v72_v18, %v46_v20 }
 0x15d   :  { %v48_v22 = vmul.f32 %v47_v21, %v28_v5  ;;  %v49_v23 = vmul.f32 %v47_v21, %v29_v6 }
 0x15f   :  { %50 = vst [vmem:[#allocation5] sm:$0xff] %v48_v22  ;;  %51 = vst [vmem:[#allocation5 + $0x8] sm:$0xff] %v49_v23 }
 0x160   :  { %106 = shalt.err (!%p103_p12)
}
 0x161   :  { %s107_s22 = scalar_lea.hbm %s158_s1, 256 }
 0x162   :  { %p108_p13 = scmp.ne.s32.totalorder %s158_s1, %s107_s22  ;;  %p111_p0 = scmp.lt.u32.totalorder %s107_s22, %s158_s1 }
 0x164   :  { %p113_p1 = pnand %p111_p0, %p108_p13 }
 0x166   :  { %116 = shalt.err (!%p113_p1)
}
 0x167   :  { %61 = dma.vmem_to_hbm [thread:$0]  %s59_s18, 256, %s158_s1, [#allocation4]  }
 0x168   :  { %119 = dma.done.wait [#allocation4], 256  }
 0x169   :  { %120 = vsyncadd [#allocation4], 4294967040 }
 0x16a   :  { %65 = vsyncpa [#allocation3], 1 }
 0x16b   :  { %66 = vsyncpa [#allocation4], 1 }

</bundles_post_ra>
